<compile_context>
chip_gen: v6e
topology: v6e:2x2x1
jax: 0.10.0
libtpu: 0.0.40
codegen_flags: <defaults>
</compile_context>

<pallas_src>
import jax
import jax.numpy as jnp
from jax.experimental import pallas as pl
from jax.experimental.pallas import tpu as pltpu

_HIDDEN = 256


def _round_up(x, m):
    return ((x + m - 1) // m) * m


def _actor_kernel(scale_ref,
                  state_ref, w1_ref, b1_ref, w2_ref, b2_ref, w3_ref, b3_ref,
                  out_ref):
    max_action = scale_ref[0, 0]

    # Layer 1: [TB, Sp] @ [Sp, 256]  (bf16 feed, f32 accumulate) + bias, relu.
    a = jnp.dot(state_ref[...], w1_ref[...],
                preferred_element_type=jnp.float32)
    a = jnp.maximum(a + b1_ref[...], 0.0)

    # Layer 2: [TB, 256] @ [256, 256] + bias, relu.
    a = jnp.dot(a.astype(w2_ref.dtype), w2_ref[...],
                preferred_element_type=jnp.float32)
    a = jnp.maximum(a + b2_ref[...], 0.0)

    # Layer 3: [TB, 256] @ [256, Ap] + bias, max_action * tanh  (f32 epilogue).
    a = jnp.dot(a.astype(w3_ref.dtype), w3_ref[...],
                preferred_element_type=jnp.float32)
    out_ref[...] = (max_action * jnp.tanh(a + b3_ref[...])).astype(out_ref.dtype)


def actor_forward(state, params, max_action, *,
                  block_b=256, compute_dtype=jnp.bfloat16):
    """state: [B, state_dim] f32. params: dict of transposed f32 weights/biases."""
    w1, b1 = params["w1"], params["b1"]
    w2, b2 = params["w2"], params["b2"]
    w3, b3 = params["w3"], params["b3"]

    B, state_dim = state.shape
    H = w1.shape[1]
    action_dim = w3.shape[1]

    # Lane-dense padding of the layer-1 K dim and the output N dim.
    s_pad = _round_up(state_dim, 128)
    a_pad = _round_up(action_dim, 128)

    # Batch tile: MXU-friendly M, but don't over-pad tiny batches.
    tb = min(block_b, _round_up(B, 8))
    b_pad = _round_up(B, tb)
    grid = (b_pad // tb,)

    # Zero-pad + cast weights for the MXU; biases stay f32 for the VPU epilogue.
    w1_p = jnp.zeros((s_pad, H), compute_dtype).at[:state_dim, :].set(
        w1.astype(compute_dtype))
    w2_c = w2.astype(compute_dtype)
    w3_p = jnp.zeros((H, a_pad), compute_dtype).at[:, :action_dim].set(
        w3.astype(compute_dtype))
    b1_f = b1.astype(jnp.float32)
    b2_f = b2.astype(jnp.float32)
    b3_p = jnp.zeros((1, a_pad), jnp.float32).at[:, :action_dim].set(
        b3.astype(jnp.float32))

    # Zero-pad the streamed state tile (padded rows/cols contribute nothing).
    state_p = jnp.zeros((b_pad, s_pad), compute_dtype).at[:B, :state_dim].set(
        state.astype(compute_dtype))

    # max_action travels as an SMEM scalar (works with traced values too).
    scale = jnp.asarray(max_action, jnp.float32).reshape(1, 1)

    itemsize = jnp.dtype(compute_dtype).itemsize
    flops = 2 * b_pad * (s_pad * H + H * H + H * a_pad)
    bytes_accessed = (state_p.size * itemsize
                      + (w1_p.size + w2_c.size + w3_p.size) * itemsize
                      + (b1_f.size + b2_f.size + b3_p.size) * 4
                      + b_pad * a_pad * 4)

    const = lambda i: (0, 0)  # weights/biases: same block every step -> resident

    out = pl.pallas_call(
        _actor_kernel,
        out_shape=jax.ShapeDtypeStruct((b_pad, a_pad), jnp.float32),
        grid=grid,
        in_specs=[
            pl.BlockSpec(memory_space=pltpu.MemorySpace.SMEM),   # max_action
            pl.BlockSpec((tb, s_pad), lambda i: (i, 0)),         # state tile
            pl.BlockSpec((s_pad, H), const),                     # w1
            pl.BlockSpec((1, H), const),                         # b1
            pl.BlockSpec((H, H), const),                         # w2
            pl.BlockSpec((1, H), const),                         # b2
            pl.BlockSpec((H, a_pad), const),                     # w3
            pl.BlockSpec((1, a_pad), const),                     # b3
        ],
        out_specs=pl.BlockSpec((tb, a_pad), lambda i: (i, 0)),
        compiler_params=pltpu.CompilerParams(
            dimension_semantics=("parallel",)),
        cost_estimate=pl.CostEstimate(
            flops=flops,
            transcendentals=b_pad * a_pad,
            bytes_accessed=bytes_accessed),
    )(scale, state_p, w1_p, b1_f, w2_c, b2_f, w3_p, b3_p)

    # Strip batch + action padding.
    return out[:B, :action_dim]


def init_params(key, state_dim, action_dim, hidden=_HIDDEN):
    """Deterministic init mirroring nn.Linear shapes (stored transposed, f32)."""
    ks = jax.random.split(key, 6)

    def uniform(k, shape, bound):
        return jax.random.uniform(k, shape, jnp.float32, -bound, bound)

    # PyTorch Linear default init: U(-1/sqrt(fan_in), 1/sqrt(fan_in))
    b1_bound = 1.0 / jnp.sqrt(state_dim)
    b2_bound = 1.0 / jnp.sqrt(hidden)
    return {
        "w1": uniform(ks[0], (state_dim, hidden), b1_bound),   # fc1.weight.T
        "b1": uniform(ks[1], (1, hidden), b1_bound),           # fc1.bias
        "w2": uniform(ks[2], (hidden, hidden), b2_bound),      # fc2.weight.T
        "b2": uniform(ks[3], (1, hidden), b2_bound),           # fc2.bias
        "w3": uniform(ks[4], (hidden, action_dim), b2_bound),  # fc3.weight.T
        "b3": uniform(ks[5], (1, action_dim), b2_bound),       # fc3.bias
    }


def actor_ref(state, params, max_action, dtype=jnp.float32):
    """Pure-JAX reference; dtype controls the matmul-input precision."""
    cast = lambda x: x.astype(dtype)
    a = jnp.dot(cast(state), cast(params["w1"]),
                preferred_element_type=jnp.float32) + params["b1"]
    a = jnp.maximum(a, 0.0)
    a = jnp.dot(cast(a), cast(params["w2"]),
                preferred_element_type=jnp.float32) + params["b2"]
    a = jnp.maximum(a, 0.0)
    a = jnp.dot(cast(a), cast(params["w3"]),
                preferred_element_type=jnp.float32) + params["b3"]
    return max_action * jnp.tanh(a)


if __name__ == "__main__":
    B, STATE_DIM, ACTION_DIM = 2, 16, 4
    MAX_ACTION = 2.0

    key = jax.random.PRNGKey(0)
    k_params, k_state = jax.random.split(key)
    params = init_params(k_params, STATE_DIM, ACTION_DIM)
    state = jax.random.normal(k_state, (B, STATE_DIM), jnp.float32)

    out = actor_forward(state, params, MAX_ACTION)
    out = jax.block_until_ready(out)
    assert out.shape == (B, ACTION_DIM)

    # Matched-precision reference (same bf16-feed / f32-accumulate dots).
    ref_bf16 = actor_ref(state, params, MAX_ACTION, dtype=jnp.bfloat16)
    assert jnp.allclose(out, ref_bf16, atol=1e-4, rtol=1e-4)

    # Sanity check against full-f32 PyTorch-equivalent math.
    ref_f32 = actor_ref(state, params, MAX_ACTION, dtype=jnp.float32)
    assert jnp.allclose(out, ref_f32, atol=5e-2, rtol=5e-2)

    print("KERNEL_OK")
</pallas_src>

<mosaic_0001>
module attributes {stable_mosaic.version = 11 : i64} {
  func.func @_actor_kernel(%arg0: i32, %arg1: memref<1x1xf32, #tpu.memory_space<smem>>, %arg2: memref<8x128xbf16, #tpu.memory_space<vmem>>, %arg3: memref<128x256xbf16, #tpu.memory_space<vmem>>, %arg4: memref<1x256xf32, #tpu.memory_space<vmem>>, %arg5: memref<256x256xbf16, #tpu.memory_space<vmem>>, %arg6: memref<1x256xf32, #tpu.memory_space<vmem>>, %arg7: memref<256x128xbf16, #tpu.memory_space<vmem>>, %arg8: memref<1x128xf32, #tpu.memory_space<vmem>>, %arg9: memref<8x128xf32, #tpu.memory_space<vmem>>) attributes {dimension_semantics = [#tpu.dimension_semantics<parallel>], iteration_bounds = array<i64: 1>, scalar_prefetch = 0 : i64, scratch_operands = 0 : i64, tpu.core_type = #tpu.core_type<tc>, window_params = [{transform_indices = @transform_0, window_bounds = array<i64: 1, 1>}, {transform_indices = @transform_1, window_bounds = array<i64: 8, 128>}, {pipeline_mode = #tpu.pipeline_mode<synchronous>, transform_indices = @transform_2, window_bounds = array<i64: 128, 256>}, {pipeline_mode = #tpu.pipeline_mode<synchronous>, transform_indices = @transform_3, window_bounds = array<i64: 1, 256>}, {pipeline_mode = #tpu.pipeline_mode<synchronous>, transform_indices = @transform_4, window_bounds = array<i64: 256, 256>}, {pipeline_mode = #tpu.pipeline_mode<synchronous>, transform_indices = @transform_5, window_bounds = array<i64: 1, 256>}, {pipeline_mode = #tpu.pipeline_mode<synchronous>, transform_indices = @transform_6, window_bounds = array<i64: 256, 128>}, {pipeline_mode = #tpu.pipeline_mode<synchronous>, transform_indices = @transform_7, window_bounds = array<i64: 1, 128>}, {transform_indices = @transform_8, window_bounds = array<i64: 8, 128>}]} {
    %c0 = arith.constant 0 : index
    %c0_0 = arith.constant 0 : index
    %0 = memref.load %arg1[%c0, %c0_0] : memref<1x1xf32, #tpu.memory_space<smem>>
    %c0_1 = arith.constant 0 : index
    %c0_2 = arith.constant 0 : index
    %1 = vector.load %arg2[%c0_1, %c0_2] : memref<8x128xbf16, #tpu.memory_space<vmem>>, vector<8x128xbf16>
    %c0_3 = arith.constant 0 : index
    %c0_4 = arith.constant 0 : index
    %2 = vector.load %arg3[%c0_3, %c0_4] : memref<128x256xbf16, #tpu.memory_space<vmem>>, vector<128x256xbf16>
    %cst = arith.constant dense<0.000000e+00> : vector<8x256xf32>
    %3 = tpu.matmul %1, %2, %cst {dimension_numbers = #tpu.dot_dimension_numbers<[1], [0], [0], [1], [0, 0, 1, 1], [], []>} : vector<8x128xbf16>, vector<128x256xbf16>, vector<8x256xf32> -> vector<8x256xf32>
    %c0_5 = arith.constant 0 : index
    %c0_6 = arith.constant 0 : index
    %4 = vector.load %arg4[%c0_5, %c0_6] : memref<1x256xf32, #tpu.memory_space<vmem>>, vector<1x256xf32>
    %5 = vector.broadcast %4 : vector<1x256xf32> to vector<8x256xf32>
    %6 = arith.addf %3, %5 : vector<8x256xf32>
    %cst_7 = arith.constant 0.000000e+00 : f32
    %7 = vector.broadcast %cst_7 : f32 to vector<8x256xf32>
    %8 = arith.maximumf %6, %7 : vector<8x256xf32>
    %9 = arith.truncf %8 : vector<8x256xf32> to vector<8x256xbf16>
    %c0_8 = arith.constant 0 : index
    %c0_9 = arith.constant 0 : index
    %10 = vector.load %arg5[%c0_8, %c0_9] : memref<256x256xbf16, #tpu.memory_space<vmem>>, vector<256x256xbf16>
    %cst_10 = arith.constant dense<0.000000e+00> : vector<8x256xf32>
    %11 = tpu.matmul %9, %10, %cst_10 {dimension_numbers = #tpu.dot_dimension_numbers<[1], [0], [0], [1], [0, 0, 1, 1], [], []>} : vector<8x256xbf16>, vector<256x256xbf16>, vector<8x256xf32> -> vector<8x256xf32>
    %c0_11 = arith.constant 0 : index
    %c0_12 = arith.constant 0 : index
    %12 = vector.load %arg6[%c0_11, %c0_12] : memref<1x256xf32, #tpu.memory_space<vmem>>, vector<1x256xf32>
    %13 = vector.broadcast %12 : vector<1x256xf32> to vector<8x256xf32>
    %14 = arith.addf %11, %13 : vector<8x256xf32>
    %cst_13 = arith.constant 0.000000e+00 : f32
    %15 = vector.broadcast %cst_13 : f32 to vector<8x256xf32>
    %16 = arith.maximumf %14, %15 : vector<8x256xf32>
    %17 = arith.truncf %16 : vector<8x256xf32> to vector<8x256xbf16>
    %c0_14 = arith.constant 0 : index
    %c0_15 = arith.constant 0 : index
    %18 = vector.load %arg7[%c0_14, %c0_15] : memref<256x128xbf16, #tpu.memory_space<vmem>>, vector<256x128xbf16>
    %cst_16 = arith.constant dense<0.000000e+00> : vector<8x128xf32>
    %19 = tpu.matmul %17, %18, %cst_16 {dimension_numbers = #tpu.dot_dimension_numbers<[1], [0], [0], [1], [0, 0, 1, 1], [], []>} : vector<8x256xbf16>, vector<256x128xbf16>, vector<8x128xf32> -> vector<8x128xf32>
    %c0_17 = arith.constant 0 : index
    %c0_18 = arith.constant 0 : index
    %20 = vector.load %arg8[%c0_17, %c0_18] : memref<1x128xf32, #tpu.memory_space<vmem>>, vector<1x128xf32>
    %21 = vector.broadcast %20 : vector<1x128xf32> to vector<8x128xf32>
    %22 = arith.addf %19, %21 : vector<8x128xf32>
    %23 = math.tanh %22 : vector<8x128xf32>
    %24 = vector.broadcast %0 : f32 to vector<8x128xf32>
    %25 = arith.mulf %24, %23 : vector<8x128xf32>
    %c0_19 = arith.constant 0 : index
    %c0_20 = arith.constant 0 : index
    %26 = vector.load %arg9[%c0_19, %c0_20] : memref<8x128xf32, #tpu.memory_space<vmem>>, vector<8x128xf32>
    tpu.vector_store %arg9[%c0_19, %c0_20], %25 {strides = array<i32>} : memref<8x128xf32, #tpu.memory_space<vmem>>, vector<8x128xf32>,
    return
  }
  func.func @transform_0(%arg0: i32) -> (i32, i32) {
    %c0_i32 = arith.constant 0 : i32
    %c0_i32_0 = arith.constant 0 : i32
    %c0_i32_1 = arith.constant 0 : i32
    return %c0_i32, %c0_i32_0 : i32, i32
  }
  func.func @transform_1(%arg0: i32) -> (i32, i32) {
    %c0_i32 = arith.constant 0 : i32
    %c0_i32_0 = arith.constant 0 : i32
    return %arg0, %c0_i32 : i32, i32
  }
  func.func @transform_2(%arg0: i32) -> (i32, i32) {
    %c0_i32 = arith.constant 0 : i32
    %c0_i32_0 = arith.constant 0 : i32
    %c0_i32_1 = arith.constant 0 : i32
    return %c0_i32, %c0_i32_0 : i32, i32
  }
  func.func @transform_3(%arg0: i32) -> (i32, i32) {
    %c0_i32 = arith.constant 0 : i32
    %c0_i32_0 = arith.constant 0 : i32
    %c0_i32_1 = arith.constant 0 : i32
    return %c0_i32, %c0_i32_0 : i32, i32
  }
  func.func @transform_4(%arg0: i32) -> (i32, i32) {
    %c0_i32 = arith.constant 0 : i32
    %c0_i32_0 = arith.constant 0 : i32
    %c0_i32_1 = arith.constant 0 : i32
    return %c0_i32, %c0_i32_0 : i32, i32
  }
  func.func @transform_5(%arg0: i32) -> (i32, i32) {
    %c0_i32 = arith.constant 0 : i32
    %c0_i32_0 = arith.constant 0 : i32
    %c0_i32_1 = arith.constant 0 : i32
    return %c0_i32, %c0_i32_0 : i32, i32
  }
  func.func @transform_6(%arg0: i32) -> (i32, i32) {
    %c0_i32 = arith.constant 0 : i32
    %c0_i32_0 = arith.constant 0 : i32
    %c0_i32_1 = arith.constant 0 : i32
    return %c0_i32, %c0_i32_0 : i32, i32
  }
  func.func @transform_7(%arg0: i32) -> (i32, i32) {
    %c0_i32 = arith.constant 0 : i32
    %c0_i32_0 = arith.constant 0 : i32
    %c0_i32_1 = arith.constant 0 : i32
    return %c0_i32, %c0_i32_0 : i32, i32
  }
  func.func @transform_8(%arg0: i32) -> (i32, i32) {
    %c0_i32 = arith.constant 0 : i32
    %c0_i32_0 = arith.constant 0 : i32
    return %arg0, %c0_i32 : i32, i32
  }
}

</mosaic_0001>

<bundles_post_ra>
// kernel: tpu_custom_call.1
= control target key start
LH: loop header
LB: loop body
LE: loop exit
PB: predicated region body
PF: predicated region fallthrough
CT: control target
= control target key end

     0   :  { %14 = vsyncpa [#allocation4], 0  ;;  %s1062_s0 = inlined_call_operand.<no memory space> [shape: f32[1,1], index: 0, kind: input, shape index: {}]   ;;  %s1063_s1 = inlined_call_operand.hbm [shape: bf16[8,128], index: 1, kind: input, shape index: {}]   ;;  %s1064_s2 = inlined_call_operand.hbm [shape: bf16[128,256], index: 2, kind: input, shape index: {}]   ;;  %s1065_s3 = inlined_call_operand.vmem [shape: f32[1,256], index: 3, kind: input, shape index: {}]   ;;  %s1066_s4 = inlined_call_operand.hbm [shape: bf16[256,256], index: 4, kind: input, shape index: {}]   ;;  %s1067_s5 = inlined_call_operand.vmem [shape: f32[1,256], index: 5, kind: input, shape index: {}]   ;;  %s1068_s6 = inlined_call_operand.hbm [shape: bf16[256,128], index: 6, kind: input, shape index: {}]   ;;  %s1069_s7 = inlined_call_operand.vmem [shape: f32[1,128], index: 7, kind: input, shape index: {}]   ;;  %s1070_s8 = inlined_call_operand.hbm [shape: f32[8,128], index: 8, kind: output, shape index: {}]  }
   0x1   :  { %15 = vsyncpa [#allocation7], 0 }
   0x2   :  { %16 = vsyncpa [#allocation10], 0 }
   0x3   :  { %17 = vsyncpa [#allocation5], 0  ;;  %s980_s27 = smov [#allocation6]  }
   0x4   :  { %s35_s28 = sshll.u32 %s980_s27, 4  ;;  %s36_s28 = int_to_ptr.vmem [resolvable:$true] %s35_s28 }
   0x5   :  { %s880_s29 = scalar_lea.vmem %s36_s28, 2048  ;;  %p885_p1 = scmp.lt.s32.totalorder %s36_s28, %s36_s28 }
   0x6   :  { %p881_p0 = scmp.ne.s32.totalorder %s36_s28, %s880_s29  ;;  %p886_p2 = scmp.lt.s32.totalorder %s880_s29, %s880_s29 }
   0x8   :  { %p887_p3 = por %p886_p2, %p885_p1 }
   0xa   :  { %p888_p4 = pnand %p887_p3, %p881_p0 }
   0xc   :  { %891 = shalt.err (!%p888_p4)
}
   0xd   :  { %s981_s30 = smov 128   ;;  %s982_s9 = smov 8  }
   0xe   :  { %41 = dma.hbm_to_vmem [thread:$0]  %s1064_s2, 2048, %s36_s28, [#allocation7], %s981_s30, %s981_s30, %s982_s9  }
   0xf   :  { %s983_s12 = smov [#allocation3]   ;;  %s984_s14 = smov [#allocation8]  }
  0x10   :  { %s26_s13 = sshll.u32 %s983_s12, 4  ;;  %s49_s15 = sshll.u32 %s984_s14, 4  ;;  %s27_s13 = int_to_ptr.vmem [resolvable:$true] %s26_s13  ;;  %s50_s15 = int_to_ptr.vmem [resolvable:$true] %s49_s15 }
  0x11   :  { %s900_s16 = scalar_lea.vmem %s27_s13, 64  ;;  %p905_p6 = scmp.lt.s32.totalorder %s27_s13, %s27_s13 }
  0x12   :  { %p901_p5 = scmp.ne.s32.totalorder %s27_s13, %s900_s16  ;;  %p906_p7 = scmp.lt.s32.totalorder %s900_s16, %s900_s16 }
  0x14   :  { %p907_p8 = por %p906_p7, %p905_p6 }
  0x16   :  { %p908_p9 = pnand %p907_p8, %p901_p5 }
  0x18   :  { %911 = shalt.err (!%p908_p9)
}
  0x19   :  { %29 = dma.hbm_to_vmem [thread:$0]  %s1063_s1, 64, %s27_s13, [#allocation4]  }
  0x1a   :  { %s920_s19 = scalar_lea.vmem %s50_s15, 4096  ;;  %p925_p11 = scmp.lt.s32.totalorder %s50_s15, %s50_s15 }
  0x1b   :  { %p921_p10 = scmp.ne.s32.totalorder %s50_s15, %s920_s19  ;;  %p926_p12 = scmp.lt.s32.totalorder %s920_s19, %s920_s19 }
  0x1d   :  { %p927_p13 = por %p926_p12, %p925_p11 }
  0x1f   :  { %p928_p0 = pnand %p927_p13, %p921_p10 }
  0x21   :  { %931 = shalt.err (!%p928_p0)
}
  0x22   :  { %55 = dma.hbm_to_vmem [thread:$0]  %s1066_s4, 4096, %s50_s15, [#allocation7], %s981_s30, %s981_s30, %s982_s9  }
  0x23   :  { %s985_s21 = smov [#allocation9]  }
  0x24   :  { %s63_s22 = sshll.u32 %s985_s21, 4  ;;  %s64_s22 = int_to_ptr.vmem [resolvable:$true] %s63_s22 }
  0x25   :  { %s940_s23 = scalar_lea.vmem %s64_s22, 2048  ;;  %p945_p2 = scmp.lt.s32.totalorder %s64_s22, %s64_s22 }
  0x26   :  { %p941_p1 = scmp.ne.s32.totalorder %s64_s22, %s940_s23  ;;  %p946_p3 = scmp.lt.s32.totalorder %s940_s23, %s940_s23 }
  0x28   :  { %p947_p4 = por %p946_p3, %p945_p2 }
  0x2a   :  { %p948_p5 = pnand %p947_p4, %p941_p1 }
  0x2c   :  { %951 = shalt.err (!%p948_p5)
}
  0x2d   :  { %s986_s1 = smov 64   ;;  %s987_s24 = smov 4  }
  0x2e   :  { %69 = dma.hbm_to_vmem [thread:$0]  %s1068_s6, 2048, %s64_s22, [#allocation10], %s986_s1, %s986_s1, %s987_s24  }
  0x2f   :  { %972 = dma.done.wait [#allocation4], 64  }
  0x30   :  { %973 = vsyncadd [#allocation4], 4294967232 }
  0x31   :  { %974 = dma.done.wait [#allocation7], 6144  }
  0x32   :  { %975 = vsyncadd [#allocation7], 4294961152 }
  0x33   :  { %976 = dma.done.wait [#allocation10], 2048  }
  0x34   :  { %977 = vsyncadd [#allocation10], 4294965248  ;;  %v988_v0 = vmov 0   ;;  %v782_v1 = vld [vmem:[#allocation6 + $0x74] ss:$8 sps:$4 sm:$0xff]   ;;  %v858_v54 = vld [vmem:[#allocation9 + $0x68] sm:$0xff]   ;;  %v105_v62 = vlaneseq }
  0x35   :  { %227 = vmatprep.mubr.bf16.mxu0 %v988_v0  ;;  %v784_v2 = vld [vmem:[#allocation6 + $0x70] ss:$8 sps:$4 sm:$0xff]   ;;  %195 = vmatprep.subr.bf16.mxu0 %v782_v1  ;;  %v785_v3 = vld [vmem:[#allocation6 + $0x64] ss:$8 sps:$4 sm:$0xff]   ;;  %v787_v4 = vld [vmem:[#allocation6 + $0x60] ss:$8 sps:$4 sm:$0xff]  }
  0x36   :  { %196 = vmatpush1.bf16.msra.mxu0 %v784_v2  ;;  %v788_v5 = vld [vmem:[#allocation6 + $0x54] ss:$8 sps:$4 sm:$0xff]   ;;  %v790_v6 = vld [vmem:[#allocation6 + $0x50] ss:$8 sps:$4 sm:$0xff]   ;;  %v791_v7 = vld [vmem:[#allocation6 + $0x44] ss:$8 sps:$4 sm:$0xff]  }
  0x37   :  { %197 = vmatprep.subr.bf16.mxu0 %v785_v3  ;;  %v793_v8 = vld [vmem:[#allocation6 + $0x40] ss:$8 sps:$4 sm:$0xff]   ;;  %v794_v9 = vld [vmem:[#allocation6 + $0x34] ss:$8 sps:$4 sm:$0xff]   ;;  %v808_v11 = vld [vmem:[#allocation8 + $0x70] ss:$8 sps:$4 sm:$0xff]  }
  0x38   :  { %v806_v10 = vld [vmem:[#allocation8 + $0x74] ss:$8 sps:$4 sm:$0xff]   ;;  %v809_v12 = vld [vmem:[#allocation8 + $0x64] ss:$8 sps:$4 sm:$0xff]   ;;  %v796_v13 = vld [vmem:[#allocation6 + $0x30] ss:$8 sps:$4 sm:$0xff]  }
  0x39   :  { %444 = vmatprep.subr.bf16.mxu1 %v806_v10  ;;  %v811_v14 = vld [vmem:[#allocation8 + $0x60] ss:$8 sps:$4 sm:$0xff]   ;;  %v812_v15 = vld [vmem:[#allocation8 + $0x54] ss:$8 sps:$4 sm:$0xff]   ;;  %v797_v16 = vld [vmem:[#allocation6 + $0x24] ss:$8 sps:$4 sm:$0xff]  }
  0x3a   :  { %198 = vmatpush1.bf16.msra.mxu0 %v787_v4  ;;  %445 = vmatpush1.bf16.msra.mxu1 %v808_v11  ;;  %v799_v17 = vld [vmem:[#allocation6 + $0x20] ss:$8 sps:$4 sm:$0xff]   ;;  %v814_v18 = vld [vmem:[#allocation8 + $0x50] ss:$8 sps:$4 sm:$0xff]   ;;  %v815_v19 = vld [vmem:[#allocation8 + $0x44] ss:$8 sps:$4 sm:$0xff]  }
  0x3b   :  { %199 = vmatprep.subr.bf16.mxu0 %v788_v5  ;;  %446 = vmatprep.subr.bf16.mxu1 %v809_v12  ;;  %v800_v20 = vld [vmem:[#allocation6 + $0x14] ss:$8 sps:$4 sm:$0xff]   ;;  %v802_v21 = vld [vmem:[#allocation6 + $0x10] ss:$8 sps:$4 sm:$0xff]   ;;  %v817_v22 = vld [vmem:[#allocation8 + $0x40] ss:$8 sps:$4 sm:$0xff]  }
  0x3c   :  { %v818_v23 = vld [vmem:[#allocation8 + $0x34] ss:$8 sps:$4 sm:$0xff]   ;;  %v803_v24 = vld [vmem:[#allocation6 + $0x4] ss:$8 sps:$4 sm:$0xff]   ;;  %v805_v25 = vld [vmem:[#allocation6] ss:$8 sps:$4 sm:$0xff]  }
  0x3d   :  { %v820_v26 = vld [vmem:[#allocation8 + $0x30] ss:$8 sps:$4 sm:$0xff]   ;;  %v821_v27 = vld [vmem:[#allocation8 + $0x24] ss:$8 sps:$4 sm:$0xff]   ;;  %v86_v28 = vld [vmem:[#allocation3] sm:$0xf] }
  0x3e   :  { %200 = vmatpush1.bf16.msra.mxu0 %v790_v6  ;;  %447 = vmatpush1.bf16.msra.mxu1 %v811_v14  ;;  %v823_v29 = vld [vmem:[#allocation8 + $0x20] ss:$8 sps:$4 sm:$0xff]   ;;  %v824_v30 = vld [vmem:[#allocation8 + $0x14] ss:$8 sps:$4 sm:$0xff]   ;;  %v826_v31 = vld [vmem:[#allocation8 + $0x10] ss:$8 sps:$4 sm:$0xff]  }
  0x3f   :  { %201 = vmatprep.subr.bf16.mxu0 %v791_v7  ;;  %448 = vmatprep.subr.bf16.mxu1 %v812_v15  ;;  %v827_v32 = vld [vmem:[#allocation8 + $0x4] ss:$8 sps:$4 sm:$0xff]   ;;  %v829_v33 = vld [vmem:[#allocation8] ss:$8 sps:$4 sm:$0xff]   ;;  %v830_v34 = vld [vmem:[#allocation8 + $0xf4] ss:$8 sps:$4 sm:$0xff]  }
  0x40   :  { %v832_v35 = vld [vmem:[#allocation8 + $0xf0] ss:$8 sps:$4 sm:$0xff]   ;;  %v833_v36 = vld [vmem:[#allocation8 + $0xe4] ss:$8 sps:$4 sm:$0xff]   ;;  %v835_v37 = vld [vmem:[#allocation8 + $0xe0] ss:$8 sps:$4 sm:$0xff]  }
  0x41   :  { %v836_v38 = vld [vmem:[#allocation8 + $0xd4] ss:$8 sps:$4 sm:$0xff]   ;;  %v838_v39 = vld [vmem:[#allocation8 + $0xd0] ss:$8 sps:$4 sm:$0xff]   ;;  %v839_v40 = vld [vmem:[#allocation8 + $0xc4] ss:$8 sps:$4 sm:$0xff]  }
  0x42   :  { %202 = vmatpush1.bf16.msra.mxu0 %v793_v8  ;;  %449 = vmatpush1.bf16.msra.mxu1 %v814_v18  ;;  %v841_v41 = vld [vmem:[#allocation8 + $0xc0] ss:$8 sps:$4 sm:$0xff]   ;;  %v842_v42 = vld [vmem:[#allocation8 + $0xb4] ss:$8 sps:$4 sm:$0xff]   ;;  %v844_v43 = vld [vmem:[#allocation8 + $0xb0] ss:$8 sps:$4 sm:$0xff]  }
  0x43   :  { %203 = vmatprep.subr.bf16.mxu0 %v794_v9  ;;  %450 = vmatprep.subr.bf16.mxu1 %v815_v19  ;;  %v845_v44 = vld [vmem:[#allocation8 + $0xa4] ss:$8 sps:$4 sm:$0xff]   ;;  %v847_v45 = vld [vmem:[#allocation8 + $0xa0] ss:$8 sps:$4 sm:$0xff]   ;;  %v848_v46 = vld [vmem:[#allocation8 + $0x94] ss:$8 sps:$4 sm:$0xff]  }
  0x44   :  { %v850_v47 = vld [vmem:[#allocation8 + $0x90] ss:$8 sps:$4 sm:$0xff]   ;;  %v851_v48 = vld [vmem:[#allocation8 + $0x84] ss:$8 sps:$4 sm:$0xff]   ;;  %v853_v49 = vld [vmem:[#allocation8 + $0x80] ss:$8 sps:$4 sm:$0xff]  }
  0x45   :  { %v854_v50 = vld [vmem:[#allocation9 + $0x78] sm:$0xff]   ;;  %v856_v52 = vld [vmem:[#allocation9 + $0x70] sm:$0xff]   ;;  %v859_v55 = vld [vmem:[#allocation9 + $0x28] sm:$0xff]   ;;  %v106_v63 = vshrl.u32 %v105_v62, 7  ;;  %s989_s9 = smov [#allocation11]  }
  0x46   :  { %204 = vmatpush1.bf16.msra.mxu0 %v796_v13  ;;  %451 = vmatpush1.bf16.msra.mxu1 %v817_v22  ;;  %v855_v51 = vld [vmem:[#allocation9 + $0x38] sm:$0xff]   ;;  %v857_v53 = vld [vmem:[#allocation9 + $0x30] sm:$0xff]   ;;  %v860_v56 = vld [vmem:[#allocation9 + $0x60] sm:$0xff]   ;;  %s674_s10 = sshll.u32 %s989_s9, 4  ;;  %s675_s10 = int_to_ptr.vmem [resolvable:$true] %s674_s10 }
  0x47   :  { %205 = vmatprep.subr.bf16.mxu0 %v797_v16  ;;  %452 = vmatprep.subr.bf16.mxu1 %v818_v23  ;;  %v861_v57 = vld [vmem:[#allocation9 + $0x20] sm:$0xff]   ;;  %v862_v58 = vld [vmem:[#allocation9 + $0x58] sm:$0xff]   ;;  %v864_v60 = vld [vmem:[#allocation9 + $0x50] sm:$0xff]   ;;  %v107_v0 = vsub.s32 0, %v106_v63  ;;  %v111_v2 = vsub.s32 1, %v106_v63  ;;  %s952_s11 = scalar_lea.vmem %s675_s10, 128  ;;  %p957_p7 = scmp.lt.s32.totalorder %s675_s10, %s675_s10 }
  0x48   :  { %v863_v59 = vld [vmem:[#allocation9 + $0x18] sm:$0xff]   ;;  %v865_v61 = vld [vmem:[#allocation9 + $0x10] sm:$0xff]   ;;  %v866_v15 = vld [vmem:[#allocation9 + $0x48] sm:$0xff]   ;;  %p953_p6 = scmp.ne.s32.totalorder %s675_s10, %s952_s11  ;;  %p958_p8 = scmp.lt.s32.totalorder %s952_s11, %s952_s11 }
  0x49   :  { %v103_v1 = vld [vmem:[%s1065_s3] sm:$0x3]  ;;  %v867_v16 = vld [vmem:[#allocation9 + $0x8] sm:$0xff]   ;;  %v869_v18 = vld [vmem:[#allocation9] sm:$0xff]  }
  0x4a   :  { %206 = vmatpush1.bf16.msra.mxu0 %v799_v17  ;;  %453 = vmatpush1.bf16.msra.mxu1 %v820_v26  ;;  %v108_v3 = vrot.slane %v103_v1, %v107_v0  ;;  %v112_v4 = vrot.slane %v103_v1, %v111_v2  ;;  %v868_v17 = vld [vmem:[#allocation9 + $0x40] sm:$0xff]   ;;  %v272_v19 = vld [vmem:[%s1067_s5] sm:$0x3]  ;;  %p959_p9 = por %p958_p8, %p957_p7 }
  0x4b   :  { %207 = vmatprep.subr.bf16.mxu0 %v800_v20  ;;  %454 = vmatprep.subr.bf16.mxu1 %v821_v27  ;;  %v277_v20 = vrot.slane %v272_v19, %v107_v0 }
  0x4c   :  { %p960_p10 = pnand %p959_p9, %p953_p6 }
  0x4e   :  { %208 = vmatpush1.bf16.msra.mxu0 %v802_v21  ;;  %455 = vmatpush1.bf16.msra.mxu1 %v823_v29  ;;  %v281_v21 = vrot.slane %v272_v19, %v111_v2 }
  0x4f   :  { %209 = vmatprep.subr.bf16.mxu0 %v803_v24  ;;  %456 = vmatprep.subr.bf16.mxu1 %v824_v30 }
  0x52   :  { %210 = vmatpush1.bf16.msra.mxu0 %v805_v25  ;;  %457 = vmatpush1.bf16.msra.mxu1 %v826_v31 }
  0x53   :  { %458 = vmatprep.subr.bf16.mxu1 %v827_v32  ;;  %750 = vmatprep.subr.bf16.mxu0 %v854_v50 }
  0x55   :  { %228 = vmatmul.mubr.bf16.vlgmr.msra.gmra.mxu0 %v86_v28 }
  0x56   :  { %459 = vmatpush1.bf16.msra.mxu1 %v829_v33  ;;  %751 = vmatpush3.bf16.msra.mxu0 %v855_v51  ;;  %v733_v33 = vld [vmem:[%s1069_s7] ss:$0 sm:$0xff] }
  0x57   :  { %460 = vmatprep.subr.bf16.mxu1 %v830_v34  ;;  %752 = vmatprep.subr.bf16.mxu0 %v856_v52 }
  0x5a   :  { %461 = vmatpush2.bf16.msra.mxu1 %v832_v35  ;;  %753 = vmatpush3.bf16.msra.mxu0 %v857_v53 }
  0x5b   :  { %462 = vmatprep.subr.bf16.mxu1 %v833_v36  ;;  %754 = vmatprep.subr.bf16.mxu0 %v858_v54 }
  0x5e   :  { %463 = vmatpush2.bf16.msra.mxu1 %v835_v37  ;;  %755 = vmatpush3.bf16.msra.mxu0 %v859_v55 }
  0x5f   :  { %464 = vmatprep.subr.bf16.mxu1 %v836_v38  ;;  %756 = vmatprep.subr.bf16.mxu0 %v860_v56 }
  0x62   :  { %465 = vmatpush2.bf16.msra.mxu1 %v838_v39  ;;  %757 = vmatpush3.bf16.msra.mxu0 %v861_v57  ;;  %v665_v39 = vstv %s1062_s0 }
  0x63   :  { %466 = vmatprep.subr.bf16.mxu1 %v839_v40  ;;  %758 = vmatprep.subr.bf16.mxu0 %v862_v58 }
  0x66   :  { %467 = vmatpush2.bf16.msra.mxu1 %v841_v41  ;;  %759 = vmatpush3.bf16.msra.mxu0 %v863_v59 }
  0x67   :  { %468 = vmatprep.subr.bf16.mxu1 %v842_v42  ;;  %760 = vmatprep.subr.bf16.mxu0 %v864_v60 }
  0x6a   :  { %469 = vmatpush2.bf16.msra.mxu1 %v844_v43  ;;  %761 = vmatpush3.bf16.msra.mxu0 %v865_v61 }
  0x6b   :  { %470 = vmatprep.subr.bf16.mxu1 %v845_v44  ;;  %762 = vmatprep.subr.bf16.mxu0 %v866_v15 }
  0x6e   :  { %471 = vmatpush2.bf16.msra.mxu1 %v847_v45  ;;  %763 = vmatpush3.bf16.msra.mxu0 %v867_v16 }
  0x6f   :  { %472 = vmatprep.subr.bf16.mxu1 %v848_v46  ;;  %764 = vmatprep.subr.bf16.mxu0 %v868_v17 }
  0x72   :  { %473 = vmatpush2.bf16.msra.mxu1 %v850_v47  ;;  %765 = vmatpush3.bf16.msra.mxu0 %v869_v18 }
  0x73   :  { %474 = vmatprep.subr.bf16.mxu1 %v851_v48 }
  0x76   :  { %475 = vmatpush2.bf16.msra.mxu1 %v853_v49 }
 0x115   :  { %v229_v5 = vpop.f32.mrf.mxu0 }
 0x116   :  { %v230_v6 = vadd.f32 %v229_v5, %v108_v3 }
 0x117   :  { %v231_v7 = vpop.f32.mrf.mxu0 }
 0x118   :  { %v232_v8 = vadd.f32 %v231_v7, %v112_v4  ;;  %v236_v9 = vmax.f32 %v230_v6, 0.0 }
 0x119   :  { %v233_v10 = vpop.f32.mrf.mxu0 }
 0x11a   :  { %v237_v11 = vmax.f32 %v232_v8, 0.0  ;;  %v238_v14 = vpack.c.bf16 %v236_v9, %v236_v9 }
 0x11b   :  { %v234_v12 = vpop.f32.mrf.mxu0 }
 0x11c   :  { %v239_v13 = vpack.c.bf16 %v237_v11, %v237_v11 }
 0x11e   :  { %476 = vmatprep.mubr.bf16.mxu1 %v239_v13 }
 0x11f   :  { %477 = vmatmul.mubr.bf16.vlgmr.msra.gmra.mxu1 %v238_v14 }
 0x1df   :  { %v478_v22 = vpop.f32.mrf.mxu1 }
 0x1e0   :  { %v479_v23 = vadd.f32 %v478_v22, %v277_v20 }
 0x1e1   :  { %v480_v24 = vpop.f32.mrf.mxu1 }
 0x1e2   :  { %v481_v25 = vadd.f32 %v480_v24, %v281_v21  ;;  %v485_v26 = vmax.f32 %v479_v23, 0.0 }
 0x1e3   :  { %v482_v27 = vpop.f32.mrf.mxu1 }
 0x1e4   :  { %v486_v28 = vmax.f32 %v481_v25, 0.0  ;;  %v487_v31 = vpack.c.bf16 %v485_v26, %v485_v26 }
 0x1e5   :  { %v483_v29 = vpop.f32.mrf.mxu1 }
 0x1e6   :  { %v488_v30 = vpack.c.bf16 %v486_v28, %v486_v28 }
 0x1e8   :  { %656 = vmatprep.mubr.bf16.mxu0 %v488_v30 }
 0x1e9   :  { %657 = vmatmul.mubr.bf16.vlgmr.msra.gmra.mxu0 %v487_v31 }
 0x2a9   :  { %v766_v32 = vpop.f32.mrf.mxu0 }
 0x2ab   :  { %v767_v34 = vpop.f32.mrf.mxu0 }
 0x2ac   :  { %v768_v35 = vadd.f32 %v767_v34, %v766_v32 }
 0x2ad   :  { %v769_v36 = vpop.f32.mrf.mxu0 }
 0x2ae   :  { %v659_v37 = vadd.f32 %v768_v35, %v733_v33 }
 0x2af   :  { %v770_v38 = vpop.f32.mrf.mxu0 }
 0x2b0   :  { %870 = vtanh.f32 %v659_v37 }
 0x2bd   :  { %v871_v40 = vpop.eup %870 }
 0x2be   :  { %v666_v41 = vmul.f32 %v871_v40, %v665_v39 }
 0x2c0   :  { %667 = vst [vmem:[#allocation11] sm:$0xff] %v666_v41 }
 0x2c1   :  { %963 = shalt.err (!%p960_p10)
}
 0x2c2   :  { %677 = dma.vmem_to_hbm [thread:$0]  %s675_s10, 128, %s1070_s8, [#allocation5]  }
 0x2c3   :  { %978 = dma.done.wait [#allocation5], 128  }
 0x2c4   :  { %979 = vsyncadd [#allocation5], 4294967168 }
 0x2c5   :  { %681 = vsyncpa [#allocation4], 1 }
 0x2c6   :  { %682 = vsyncpa [#allocation7], 1 }
 0x2c7   :  { %683 = vsyncpa [#allocation10], 1 }
 0x2c8   :  { %684 = vsyncpa [#allocation5], 1 }

</bundles_post_ra>
